<compile_context>
chip_gen: v5e
topology: v5e:2x2
jax: 0.10.0
libtpu: 0.0.40
codegen_flags: <defaults>
</compile_context>

<pallas_src>
import functools

import jax
import jax.numpy as jnp
from jax.experimental import pallas as pl
from jax.experimental.pallas import tpu as pltpu

_LANE = 128
_SUBLANE = 8


def _round_up(x, m):
    return (x + m - 1) // m * m


def _self_attention_kernel(x_ref, w_ref, o_ref, *, d_out, seq_len, d_out_p, q_tile):
    f32 = jnp.float32
    bf16 = jnp.bfloat16

    i = pl.program_id(0)
    row0 = pl.multiple_of(i * q_tile, _SUBLANE)

    x_all = x_ref[...]                              # (S_pad, d_in_p) bf16 — all rows
    x_q = x_ref[pl.ds(row0, q_tile), :]             # (tq,    d_in_p) bf16 — this tile's queries

    # Q projection for this tile; fold the 1/sqrt(d_out) softmax scale into Q
    # (touches tq*d_out_p elements instead of the (tq, S) score matrix).
    scale = 1.0 / (d_out ** 0.5)
    q = jnp.dot(x_q, w_ref[:, :d_out_p], preferred_element_type=f32) * scale   # (tq, d_out_p)

    # Fused K|V projection: one MXU pass over all rows, 2*d_out_p lanes wide.
    kv = jnp.dot(x_all, w_ref[:, d_out_p:], preferred_element_type=f32).astype(bf16)
    k = kv[:, :d_out_p]                             # (S_pad, d_out_p) bf16
    v = kv[:, d_out_p:]                             # (S_pad, d_out_p) bf16

    # scores = Q @ K.T without any in-kernel transpose: contract the last dims.
    s = jax.lax.dot_general(
        q.astype(bf16), k,
        dimension_numbers=(((1,), (1,)), ((), ())),
        preferred_element_type=f32,
    )                                               # (tq, S_pad) f32

    # Mask padded key columns (no-op when seq_len == S_pad).
    col = jax.lax.broadcasted_iota(jnp.int32, s.shape, 1)
    s = jnp.where(col < seq_len, s, -jnp.inf)

    # Numerically-stable softmax; reciprocal-multiply (EUP) instead of VPU divide.
    m = jnp.max(s, axis=-1, keepdims=True)
    e = jnp.exp(s - m)
    denom = jnp.sum(e, axis=-1, keepdims=True)
    attn = e * pl.reciprocal(denom, approx=True)

    # context = attn @ V  (bf16 into the MXU, f32 accumulate).
    ctx = jnp.dot(attn.astype(bf16), v, preferred_element_type=f32)
    o_ref[...] = ctx.astype(o_ref.dtype)            # (tq, d_out_p)


def self_attention(x, w_query, w_key, w_value, *, q_tile=256):
    """x: (S, d_in) f32; w_*: (d_out, d_in) f32 (PyTorch nn.Linear layout).

    Returns context vectors (S, d_out) f32.
    """
    S, d_in = x.shape
    d_out = w_query.shape[0]

    # Lane-dense padded sizes.
    d_in_p = _round_up(d_in, _LANE)
    d_out_p = _round_up(d_out, _LANE)
    s8 = _round_up(S, _SUBLANE)
    tq = min(q_tile, s8)                 # query-row tile (multiple of 8)
    s_pad = _round_up(s8, tq)
    n_tiles = s_pad // tq

    # Fused, pre-transposed, zero-padded QKV weight slab: (d_in_p, 3*d_out_p), bf16.
    def _pad_t(w):
        return jnp.zeros((d_in_p, d_out_p), jnp.float32).at[:d_in, :d_out].set(w.T)

    w_fused = jnp.concatenate(
        [_pad_t(w_query), _pad_t(w_key), _pad_t(w_value)], axis=1
    ).astype(jnp.bfloat16)

    # Zero-padded, bf16 activations (single copy; queries are sliced in-kernel).
    x_p = (
        jnp.zeros((s_pad, d_in_p), jnp.float32).at[:S, :d_in].set(x).astype(jnp.bfloat16)
    )

    kernel = functools.partial(
        _self_attention_kernel, d_out=d_out, seq_len=S, d_out_p=d_out_p, q_tile=tq
    )

    flops = (
        2 * S * d_in * d_out                       # Q projection
        + 2 * n_tiles * s_pad * d_in * 2 * d_out   # K|V projection (per tile)
        + 2 * S * s_pad * d_out                    # Q @ K.T
        + 2 * S * s_pad * d_out                    # attn @ V
    )
    cost = pl.CostEstimate(
        flops=flops,
        transcendentals=S * s_pad,
        bytes_accessed=(
            s_pad * d_in_p * 2 + 3 * d_in_p * d_out_p * 2 + s_pad * d_out_p * 4
        ),
    )

    out = pl.pallas_call(
        kernel,
        out_shape=jax.ShapeDtypeStruct((s_pad, d_out_p), jnp.float32),
        grid_spec=pltpu.PrefetchScalarGridSpec(
            num_scalar_prefetch=0,
            grid=(n_tiles,),
            in_specs=[
                pl.BlockSpec((s_pad, d_in_p), lambda i: (0, 0)),         # all rows (Q slice + K/V)
                pl.BlockSpec((d_in_p, 3 * d_out_p), lambda i: (0, 0)),   # fused [Wq|Wk|Wv]^T
            ],
            out_specs=pl.BlockSpec((tq, d_out_p), lambda i: (i, 0)),
        ),
        compiler_params=pltpu.CompilerParams(
            dimension_semantics=("parallel",),
        ),
        cost_estimate=cost,
    )(x_p, w_fused)

    return out[:S, :d_out]


def _init_linear_weight(key, d_out, d_in):
    # PyTorch nn.Linear default init: U(-1/sqrt(d_in), 1/sqrt(d_in))
    bound = 1.0 / (d_in ** 0.5)
    return jax.random.uniform(key, (d_out, d_in), jnp.float32, -bound, bound)


if __name__ == "__main__":
    # Small shapes consistent with the module: seq=8 tokens, row_size (d_in)=32,
    # column_size (d_out)=16, qkv_bias=False.
    seq, d_in, d_out = 8, 32, 16

    root = jax.random.PRNGKey(0)
    kx, kq, kk, kv = jax.random.split(root, 4)

    x = jax.random.normal(kx, (seq, d_in), jnp.float32)
    w_query = _init_linear_weight(kq, d_out, d_in)
    w_key = _init_linear_weight(kk, d_out, d_in)
    w_value = _init_linear_weight(kv, d_out, d_in)

    out = self_attention(x, w_query, w_key, w_value)
    jax.block_until_ready(out)

    # Pure-JAX f32 reference (same math as the PyTorch forward). Kernel runs the
    # matmuls in bf16 with f32 accumulation, so use a bf16-appropriate tolerance.
    q = x @ w_query.T
    k = x @ w_key.T
    v = x @ w_value.T
    ref = jax.nn.softmax((q @ k.T) / (d_out ** 0.5), axis=-1) @ v

    assert out.shape == ref.shape
    assert jnp.allclose(out, ref, atol=5e-2, rtol=5e-2), (
        float(jnp.max(jnp.abs(out - ref)))
    )

    print("KERNEL_OK")
</pallas_src>

<mosaic_0001>
module attributes {stable_mosaic.version = 11 : i64} {
  func.func @_self_attention_kernel(%arg0: i32, %arg1: memref<8x128xbf16, #tpu.memory_space<vmem>>, %arg2: memref<128x384xbf16, #tpu.memory_space<vmem>>, %arg3: memref<8x128xf32, #tpu.memory_space<vmem>>) attributes {dimension_semantics = [#tpu.dimension_semantics<parallel>], iteration_bounds = array<i64: 1>, scalar_prefetch = 0 : i64, scratch_operands = 0 : i64, tpu.core_type = #tpu.core_type<tc>, window_params = [{pipeline_mode = #tpu.pipeline_mode<synchronous>, transform_indices = @transform_0, window_bounds = array<i64: 8, 128>}, {pipeline_mode = #tpu.pipeline_mode<synchronous>, transform_indices = @transform_1, window_bounds = array<i64: 128, 384>}, {transform_indices = @transform_2, window_bounds = array<i64: 8, 128>}]} {
    %c8_i32 = arith.constant 8 : i32
    %0 = arith.muli %arg0, %c8_i32 : i32
    %1 = tpu.assume_multiple %0, 8 : i32
    %c0 = arith.constant 0 : index
    %c0_0 = arith.constant 0 : index
    %2 = vector.load %arg1[%c0, %c0_0] : memref<8x128xbf16, #tpu.memory_space<vmem>>, vector<8x128xbf16>
    %3 = arith.index_cast %1 : i32 to index
    %c0_1 = arith.constant 0 : index
    %4 = vector.load %arg1[%3, %c0_1] : memref<8x128xbf16, #tpu.memory_space<vmem>>, vector<8x128xbf16>
    %c0_2 = arith.constant 0 : index
    %c0_3 = arith.constant 0 : index
    %5 = vector.load %arg2[%c0_2, %c0_3] : memref<128x384xbf16, #tpu.memory_space<vmem>>, vector<128x128xbf16>
    %cst = arith.constant dense<0.000000e+00> : vector<8x128xf32>
    %6 = tpu.matmul %4, %5, %cst {dimension_numbers = #tpu.dot_dimension_numbers<[1], [0], [0], [1], [0, 0, 1, 1], [], []>} : vector<8x128xbf16>, vector<128x128xbf16>, vector<8x128xf32> -> vector<8x128xf32>
    %cst_4 = arith.constant 2.500000e-01 : f32
    %7 = vector.broadcast %cst_4 : f32 to vector<8x128xf32>
    %8 = arith.mulf %6, %7 : vector<8x128xf32>
    %c0_5 = arith.constant 0 : index
    %c128 = arith.constant 128 : index
    %9 = vector.load %arg2[%c0_5, %c128] : memref<128x384xbf16, #tpu.memory_space<vmem>>, vector<128x256xbf16>
    %cst_6 = arith.constant dense<0.000000e+00> : vector<8x256xf32>
    %10 = tpu.matmul %2, %9, %cst_6 {dimension_numbers = #tpu.dot_dimension_numbers<[1], [0], [0], [1], [0, 0, 1, 1], [], []>} : vector<8x128xbf16>, vector<128x256xbf16>, vector<8x256xf32> -> vector<8x256xf32>
    %11 = arith.truncf %10 : vector<8x256xf32> to vector<8x256xbf16>
    %12 = vector.extract_strided_slice %11 {offsets = [0, 0], sizes = [8, 128], strides = [1, 1]} : vector<8x256xbf16> to vector<8x128xbf16>
    %13 = vector.extract_strided_slice %11 {offsets = [0, 128], sizes = [8, 128], strides = [1, 1]} : vector<8x256xbf16> to vector<8x128xbf16>
    %14 = arith.truncf %8 : vector<8x128xf32> to vector<8x128xbf16>
    %cst_7 = arith.constant dense<0.000000e+00> : vector<8x8xf32>
    %15 = tpu.matmul %14, %12, %cst_7 {dimension_numbers = #tpu.dot_dimension_numbers<[1], [1], [0], [0], [0, 0, 1, 0], [], []>} : vector<8x128xbf16>, vector<8x128xbf16>, vector<8x8xf32> -> vector<8x8xf32>
    %16 = tpu.iota {dimensions = array<i32: 1>} : vector<8x8xi32>
    %c8_i32_8 = arith.constant 8 : i32
    %17 = vector.broadcast %c8_i32_8 : i32 to vector<8x8xi32>
    %18 = arith.cmpi slt, %16, %17 : vector<8x8xi32>
    %cst_9 = arith.constant 0xFF800000 : f32
    %19 = vector.broadcast %cst_9 : f32 to vector<8x8xf32>
    %20 = arith.select %18, %15, %19 : vector<8x8xi1>, vector<8x8xf32>
    %cst_10 = arith.constant dense<0xFF800000> : vector<8xf32>
    %21 = vector.multi_reduction <maximumf>, %20, %cst_10 [1] : vector<8x8xf32> to vector<8xf32>
    %22 = vector.shape_cast %21 : vector<8xf32> to vector<8x1xf32>
    %23 = vector.broadcast %22 : vector<8x1xf32> to vector<8x8xf32>
    %24 = arith.subf %20, %23 : vector<8x8xf32>
    %25 = math.exp %24 : vector<8x8xf32>
    %cst_11 = arith.constant dense<0.000000e+00> : vector<8xf32>
    %26 = vector.multi_reduction <add>, %25, %cst_11 [1] : vector<8x8xf32> to vector<8xf32>
    %27 = vector.shape_cast %26 : vector<8xf32> to vector<8x1xf32>
    %28 = tpu.reciprocal %27 {approx = true} : vector<8x1xf32> -> vector<8x1xf32>
    %29 = vector.broadcast %28 : vector<8x1xf32> to vector<8x8xf32>
    %30 = arith.mulf %25, %29 : vector<8x8xf32>
    %31 = arith.truncf %30 : vector<8x8xf32> to vector<8x8xbf16>
    %cst_12 = arith.constant dense<0.000000e+00> : vector<8x128xf32>
    %32 = tpu.matmul %31, %13, %cst_12 {dimension_numbers = #tpu.dot_dimension_numbers<[1], [0], [0], [1], [0, 0, 1, 1], [], []>} : vector<8x8xbf16>, vector<8x128xbf16>, vector<8x128xf32> -> vector<8x128xf32>
    %c0_13 = arith.constant 0 : index
    %c0_14 = arith.constant 0 : index
    %33 = vector.load %arg3[%c0_13, %c0_14] : memref<8x128xf32, #tpu.memory_space<vmem>>, vector<8x128xf32>
    tpu.vector_store %arg3[%c0_13, %c0_14], %32 {strides = array<i32>} : memref<8x128xf32, #tpu.memory_space<vmem>>, vector<8x128xf32>,
    return
  }
  func.func @transform_0(%arg0: i32) -> (i32, i32) {
    %c0_i32 = arith.constant 0 : i32
    %c0_i32_0 = arith.constant 0 : i32
    %c0_i32_1 = arith.constant 0 : i32
    return %c0_i32, %c0_i32_0 : i32, i32
  }
  func.func @transform_1(%arg0: i32) -> (i32, i32) {
    %c0_i32 = arith.constant 0 : i32
    %c0_i32_0 = arith.constant 0 : i32
    %c0_i32_1 = arith.constant 0 : i32
    return %c0_i32, %c0_i32_0 : i32, i32
  }
  func.func @transform_2(%arg0: i32) -> (i32, i32) {
    %c0_i32 = arith.constant 0 : i32
    %c0_i32_0 = arith.constant 0 : i32
    return %arg0, %c0_i32 : i32, i32
  }
}

</mosaic_0001>

<bundles_post_ra>
// kernel: tpu_custom_call.1
= control target key start
LH: loop header
LB: loop body
LE: loop exit
PB: predicated region body
PF: predicated region fallthrough
CT: control target
= control target key end

     0   :  { %7 = vsyncpa [#allocation3], 0  ;;  %s566_s0 = inlined_call_operand.hbm [shape: bf16[8,128], index: 0, kind: input, shape index: {}]   ;;  %s567_s1 = inlined_call_operand.hbm [shape: bf16[128,384], index: 1, kind: input, shape index: {}]   ;;  %s568_s2 = inlined_call_operand.hbm [shape: f32[8,128], index: 2, kind: output, shape index: {}]  }
   0x1   :  { %8 = vsyncpa [#allocation6], 0 }
   0x2   :  { %9 = vsyncpa [#allocation4], 0  ;;  %s15_s11 = sshll.u32 %s566_s0, 4  ;;  %s534_s12 = smov [#allocation2]   ;;  %s16_s11 = int_to_ptr.hbm [resolvable:$true] %s15_s11 }
   0x3   :  { %s17_s13 = sshll.u32 %s534_s12, 4  ;;  %s25_s16 = sshll.u32 %s567_s1, 4  ;;  %s18_s13 = int_to_ptr.vmem [resolvable:$true] %s17_s13  ;;  %s26_s16 = int_to_ptr.hbm [resolvable:$true] %s25_s16 }
   0x4   :  { %20 = dma.hbm_to_vmem [thread:$0]  %s16_s11, 64, %s18_s13, [#allocation3]  }
   0x5   :  { %s535_s17 = smov [#allocation5]   ;;  %s536_s19 = smov 192  }
   0x6   :  { %s27_s18 = sshll.u32 %s535_s17, 4  ;;  %s537_s20 = smov 12   ;;  %s28_s18 = int_to_ptr.vmem [resolvable:$true] %s27_s18 }
   0x7   :  { %33 = dma.hbm_to_vmem [thread:$0]  %s26_s16, 3072, %s28_s18, [#allocation6], %s536_s19, %s536_s19, %s537_s20  }
   0x8   :  { %528 = dma.done.wait [#allocation3], 64  }
   0x9   :  { %529 = vsyncadd [#allocation3], 4294967232 }
   0xa   :  { %530 = dma.done.wait [#allocation6], 3072  }
   0xb   :  { %531 = vsyncadd [#allocation6], 4294964224  ;;  %v416_v0 = vld [vmem:[#allocation5 + $0xac] sm:$0xf]  ;;  %v446_v1 = vld [vmem:[#allocation5 + $0xb4] sm:$0xf0] }
   0xc   :  { %v445_v2 = vld [vmem:[#allocation5 + $0xb0] sm:$0xf]  ;;  %v417_v3 = vor.u32 %v446_v1, %v416_v0  ;;  %v418_v4 = vld [vmem:[#allocation5 + $0xb8] sm:$0xf0]  ;;  %v356_v5 = vld [vmem:[#allocation5 + $0xa8] sm:$0xf] }
   0xd   :  { %v430_v6 = vld [vmem:[#allocation5 + $0xb0] sm:$0xf0]  ;;  %v421_v7 = vor.u32 %v445_v2, %v418_v4  ;;  %v444_v10 = vld [vmem:[#allocation5 + $0x9c] sm:$0xf0]  ;;  %v443_v11 = vld [vmem:[#allocation5 + $0x98] sm:$0xf] }
   0xe   :  { %v357_v8 = vor.u32 %v430_v6, %v356_v5  ;;  %v408_v9 = vld [vmem:[#allocation5 + $0x94] sm:$0xf]  ;;  %224 = vmatpush.bf16.msra.mxu1 %v417_v3  ;;  %v410_v13 = vld [vmem:[#allocation5 + $0xa0] sm:$0xf0]  ;;  %v352_v14 = vld [vmem:[#allocation5 + $0x90] sm:$0xf] }
   0xf   :  { %v409_v12 = vor.u32 %v444_v10, %v408_v9  ;;  %v429_v15 = vld [vmem:[#allocation5 + $0x98] sm:$0xf0]  ;;  %237 = vmatpush.bf16.msra.mxu2 %v421_v7  ;;  %v413_v16 = vor.u32 %v443_v11, %v410_v13  ;;  %v442_v19 = vld [vmem:[#allocation5 + $0x84] sm:$0xf0]  ;;  %v441_v20 = vld [vmem:[#allocation5 + $0x80] sm:$0xf] }
  0x10   :  { %114 = vmatpush.bf16.msra.mxu0 %v357_v8  ;;  %v353_v17 = vor.u32 %v429_v15, %v352_v14  ;;  %v400_v18 = vld [vmem:[#allocation5 + $0x7c] sm:$0xf]  ;;  %v402_v21 = vld [vmem:[#allocation5 + $0x88] sm:$0xf0]  ;;  %v348_v22 = vld [vmem:[#allocation5 + $0x78] sm:$0xf] }
  0x11   :  { %v428_v23 = vld [vmem:[#allocation5 + $0x80] sm:$0xf0]  ;;  %v401_v24 = vor.u32 %v442_v19, %v400_v18  ;;  %v405_v25 = vor.u32 %v441_v20, %v402_v21  ;;  %v440_v28 = vld [vmem:[#allocation5 + $0x6c] sm:$0xf0]  ;;  %v439_v29 = vld [vmem:[#allocation5 + $0x68] sm:$0xf] }
  0x12   :  { %225 = vmatpush.bf16.msra.mxu1 %v409_v12  ;;  %v349_v26 = vor.u32 %v428_v23, %v348_v22  ;;  %v392_v27 = vld [vmem:[#allocation5 + $0x64] sm:$0xf]  ;;  %v394_v30 = vld [vmem:[#allocation5 + $0x70] sm:$0xf0]  ;;  %v344_v31 = vld [vmem:[#allocation5 + $0x60] sm:$0xf]  ;;  %v265_v22 = vlaneseq }
  0x13   :  { %238 = vmatpush.bf16.msra.mxu2 %v413_v16  ;;  %v427_v32 = vld [vmem:[#allocation5 + $0x68] sm:$0xf0]  ;;  %v393_v33 = vor.u32 %v440_v28, %v392_v27  ;;  %v397_v34 = vor.u32 %v439_v29, %v394_v30  ;;  %v438_v37 = vld [vmem:[#allocation5 + $0x54] sm:$0xf0]  ;;  %v437_v38 = vld [vmem:[#allocation5 + $0x50] sm:$0xf] }
  0x14   :  { %115 = vmatpush.bf16.msra.mxu0 %v353_v17  ;;  %v345_v35 = vor.u32 %v427_v32, %v344_v31  ;;  %v384_v36 = vld [vmem:[#allocation5 + $0x4c] sm:$0xf]  ;;  %v386_v39 = vld [vmem:[#allocation5 + $0x58] sm:$0xf0]  ;;  %v340_v40 = vld [vmem:[#allocation5 + $0x48] sm:$0xf] }
  0x15   :  { %v426_v41 = vld [vmem:[#allocation5 + $0x50] sm:$0xf0]  ;;  %v385_v42 = vor.u32 %v438_v37, %v384_v36  ;;  %v389_v43 = vor.u32 %v437_v38, %v386_v39  ;;  %v436_v46 = vld [vmem:[#allocation5 + $0x3c] sm:$0xf0]  ;;  %v435_v47 = vld [vmem:[#allocation5 + $0x38] sm:$0xf] }
  0x16   :  { %226 = vmatpush.bf16.msra.mxu1 %v401_v24  ;;  %v341_v44 = vor.u32 %v426_v41, %v340_v40  ;;  %v376_v45 = vld [vmem:[#allocation5 + $0x34] sm:$0xf]  ;;  %v378_v48 = vld [vmem:[#allocation5 + $0x40] sm:$0xf0]  ;;  %v336_v49 = vld [vmem:[#allocation5 + $0x30] sm:$0xf] }
  0x17   :  { %239 = vmatpush.bf16.msra.mxu2 %v405_v25  ;;  %v425_v50 = vld [vmem:[#allocation5 + $0x38] sm:$0xf0]  ;;  %v377_v51 = vor.u32 %v436_v46, %v376_v45  ;;  %v381_v52 = vor.u32 %v435_v47, %v378_v48  ;;  %v434_v55 = vld [vmem:[#allocation5 + $0x24] sm:$0xf0]  ;;  %v433_v56 = vld [vmem:[#allocation5 + $0x20] sm:$0xf] }
  0x18   :  { %116 = vmatpush.bf16.msra.mxu0 %v349_v26  ;;  %v337_v53 = vor.u32 %v425_v50, %v336_v49  ;;  %v368_v54 = vld [vmem:[#allocation5 + $0x1c] sm:$0xf]  ;;  %v370_v57 = vld [vmem:[#allocation5 + $0x28] sm:$0xf0]  ;;  %v332_v58 = vld [vmem:[#allocation5 + $0x18] sm:$0xf] }
  0x19   :  { %v424_v59 = vld [vmem:[#allocation5 + $0x20] sm:$0xf0]  ;;  %v369_v60 = vor.u32 %v434_v55, %v368_v54  ;;  %v373_v61 = vor.u32 %v433_v56, %v370_v57  ;;  %v432_v0 = vld [vmem:[#allocation5 + $0xc] sm:$0xf0]  ;;  %v431_v1 = vld [vmem:[#allocation5 + $0x8] sm:$0xf] }
  0x1a   :  { %227 = vmatpush.bf16.msra.mxu1 %v393_v33  ;;  %v333_v62 = vor.u32 %v424_v59, %v332_v58  ;;  %v360_v63 = vld [vmem:[#allocation5 + $0x4] sm:$0xf]  ;;  %v362_v2 = vld [vmem:[#allocation5 + $0x10] sm:$0xf0]  ;;  %v328_v3 = vld [vmem:[#allocation5] sm:$0xf] }
  0x1b   :  { %240 = vmatpush.bf16.msra.mxu2 %v397_v34  ;;  %v423_v4 = vld [vmem:[#allocation5 + $0x8] sm:$0xf0]  ;;  %v361_v5 = vor.u32 %v432_v0, %v360_v63  ;;  %v365_v6 = vor.u32 %v431_v1, %v362_v2  ;;  %v44_v8 = vld [vmem:[#allocation2] sm:$0xf]  ;;  %vm288_vm0 = vcmask 1043456   ;;  %v266_v23 = vand.u32 127, %v265_v22 }
  0x1c   :  { %117 = vmatpush.bf16.msra.mxu0 %v345_v35  ;;  %v329_v7 = vor.u32 %v423_v4, %v328_v3  ;;  %v49_v9 = vld [vmem:[#allocation2] sm:$0xf]  ;;  %vm269_vm2 = vcmask 64512   ;;  %s538_s0 = smov [#allocation7]   ;;  %s313_s23 = sshll.u32 %s568_s2, 4  ;;  %s314_s23 = int_to_ptr.hbm [resolvable:$true] %s313_s23 }
  0x1d   :  { %vm267_vm1 = vcmp.lt.s32.totalorder %v266_v23, 8  ;;  %s311_s1 = sshll.u32 %s538_s0, 4  ;;  %s312_s1 = int_to_ptr.vmem [resolvable:$true] %s311_s1 }
  0x1e   :  { %228 = vmatpush.bf16.msra.mxu1 %v385_v42 }
  0x1f   :  { %241 = vmatpush.bf16.msra.mxu2 %v389_v43 }
  0x20   :  { %118 = vmatpush.bf16.msra.mxu0 %v341_v44 }
  0x22   :  { %229 = vmatpush.bf16.msra.mxu1 %v377_v51 }
  0x23   :  { %242 = vmatpush.bf16.msra.mxu2 %v381_v52 }
  0x24   :  { %119 = vmatpush.bf16.msra.mxu0 %v337_v53 }
  0x26   :  { %230 = vmatpush.bf16.msra.mxu1 %v369_v60 }
  0x27   :  { %243 = vmatpush.bf16.msra.mxu2 %v373_v61 }
  0x28   :  { %120 = vmatpush.bf16.msra.mxu0 %v333_v62 }
  0x2a   :  { %231 = vmatpush.bf16.msra.mxu1 %v361_v5 }
  0x2b   :  { %244 = vmatpush.bf16.msra.mxu2 %v365_v6 }
  0x2c   :  { %121 = vmatpush.bf16.msra.mxu0 %v329_v7 }
  0x2d   :  { %232 = vmatmul.bf16.vlgmr.msra.gmra.mxu1 %v44_v8 }
  0x2e   :  { %245 = vmatmul.bf16.vlgmr.msra.gmra.mxu2 %v44_v8 }
  0x2f   :  { %122 = vmatmul.bf16.vlgmr.msra.gmra.mxu0 %v49_v9 }
  0xaa   :  { %v233_v10 = vpop.f32.mrf.mxu1 }
  0xac   :  { %v123_v11 = vpop.f32.mrf.mxu0 }
  0xad   :  { %v127_v15 = vmul.f32 0.25, %v123_v11 }
  0xaf   :  { %v251_v19 = vpack.c.bf16 %v127_v15, %v127_v15 }
  0xb1   :  { %v246_v12 = vpop.f32.mrf.mxu2 }
  0xb2   :  { %v250_v13 = vpack.c.bf16 %v246_v12, %v233_v10  ;;  %v235_v14 = vpop.f32.mrf.mxu1 }
  0xb4   :  { %v125_v16 = vpop.f32.mrf.mxu0  ;;  %v283_v17 = vunpack.c.h.b16 %v250_v13  ;;  %259 = vmatpush.bf16.xpose.msra.mxu3 %v250_v13 }
  0xb6   :  { %v284_v18 = vpack.c.b16 %v283_v17, %v283_v17 }
  0xb8   :  { %v290_v20 = vsel %vm288_vm0, %v284_v18, 0 }
  0xb9   :  { %v248_v21 = vpop.f32.mrf.mxu2 }
  0xbb   :  { %260 = vmatmul.bf16.vlgmr.msra.gmra.mxu3 %v251_v19 }
  0xbc   :  { %299 = vmatpush.bf16.msrb.mxu3 %v290_v20 }
 0x13e   :  { %v261_v24 = vpop.f32.mrf.mxu3 }
 0x13f   :  { %v268_v25 = vsel %vm267_vm1, %v261_v24, -inf }
 0x140   :  { %v270_v26 = vsel %vm269_vm2, %v268_v25, -inf }
 0x141   :  { %271 = vmax.xlane.f32.xlu0 %v270_v26 }
 0x146   :  { %v263_v27 = vpop.f32.mrf.mxu3 }
 0x1b4   :  { %v272_v28 = vpop.xlane.xlu0 %271 }
 0x1b5   :  { %v273_v29 = vsub.f32 %v268_v25, %v272_v28 }
 0x1b7   :  { %v274_v30 = vmul.f32 1.442695, %v273_v29 }
 0x1b9   :  { %452 = vpow2.f32 %v274_v30 }
 0x1bf   :  { %v453_v31 = vpop.eup %452 }
 0x1c0   :  { %v276_v32 = vsel %vm269_vm2, %v453_v31, 0.0 }
 0x1c1   :  { %277 = vadd.xlane.f32.xlu0 %v276_v32 }
 0x234   :  { %v278_v33 = vpop.xlane.xlu0 %277 }
 0x235   :  { %454 = vrcp.f32 %v278_v33 }
 0x23b   :  { %v455_v34 = vpop.eup %454 }
 0x23c   :  { %v280_v35 = vmul.f32 %v455_v34, %v453_v31 }
 0x23e   :  { %v281_v36 = vpack.c.bf16 %v280_v35, %v280_v35 }
 0x240   :  { %422 = vmatmul.msk.bf16.vlgmr.msrb.gmra.mxu3 %vm269_vm2, %v281_v36 }
 0x2c3   :  { %v301_v37 = vpop.f32.mrf.mxu3 }
 0x2c4   :  { %305 = vst [vmem:[#allocation7] sm:$0xff] %v301_v37 }
 0x2c5   :  { %316 = dma.vmem_to_hbm [thread:$0]  %s312_s1, 128, %s314_s23, [#allocation4]  }
 0x2cb   :  { %v303_v38 = vpop.f32.mrf.mxu3 }
 0x2cc   :  { %532 = dma.done.wait [#allocation4], 128  }
 0x2cd   :  { %533 = vsyncadd [#allocation4], 4294967168 }
 0x2ce   :  { %321 = vsyncpa [#allocation3], 1 }
 0x2cf   :  { %322 = vsyncpa [#allocation6], 1 }
 0x2d0   :  { %323 = vsyncpa [#allocation4], 1 }

</bundles_post_ra>
